<compile_context>
chip_gen: v5e
topology: v5e:2x2
jax: 0.10.0
libtpu: 0.0.40
codegen_flags: <defaults>
</compile_context>

<pallas_src>
import functools

import jax
import jax.numpy as jnp
from jax.experimental import pallas as pl
from jax.experimental.pallas import tpu as pltpu


def _round_up(n, m):
    return ((n + m - 1) // m) * m


def fnn_kernel(x_ref, w1_ref, b1_ref, w2_ref, b2_ref, w3_ref, b3_ref,
               w4_ref, b4_ref, w5_ref, b5_ref, o_ref):
    """One batch tile: 5 fused Linear layers.  bf16 MXU inputs, f32 accumulation."""

    def layer(h_bf16, w_ref, b_ref, relu):
        h = jnp.dot(h_bf16, w_ref[...], preferred_element_type=jnp.float32) + b_ref[...]
        if relu:
            h = jnp.maximum(h, 0.0)
        return h

    x = x_ref[...].astype(jnp.bfloat16)                                # narrow f32 read, VPU cast
    h = layer(x, w1_ref, b1_ref, True).astype(jnp.bfloat16)            # Linear(F,64)+ReLU (+Dropout=id)
    h = layer(h, w2_ref, b2_ref, True).astype(jnp.bfloat16)            # Linear(64,128)+ReLU
    h = layer(h, w3_ref, b3_ref, True).astype(jnp.bfloat16)            # Linear(128,128)+ReLU
    h = layer(h, w4_ref, b4_ref, True).astype(jnp.bfloat16)            # Linear(128,64)+ReLU
    o_ref[...] = layer(h, w5_ref, b5_ref, False).astype(jnp.bfloat16)  # Linear(64,OUT) logits (bf16 writeback)


def prepare_fnn_params(params):
    """Pad + cast weights ONCE (hoisted out of the per-forward-call path).

    Every hidden/output dim is zero-padded to a multiple of 128 lanes (numerically exact:
    padded units have zero weights and zero bias -> zero activation).  The first layer's
    input dim is left at the true feature count so x can be streamed unpadded.
    params: list of (W [in, out] f32, b [1, out] f32).
    """
    prepared = []
    for li, (w, b) in enumerate(params):
        ip = w.shape[0] if li == 0 else _round_up(w.shape[0], 128)
        op = _round_up(w.shape[1], 128)
        w_p = jnp.zeros((ip, op), jnp.bfloat16).at[:w.shape[0], :w.shape[1]].set(
            w.astype(jnp.bfloat16))
        b_p = jnp.zeros((1, op), jnp.float32).at[:, :b.shape[1]].set(b.astype(jnp.float32))
        prepared.append((w_p, b_p))
    return tuple(prepared)


@functools.partial(jax.jit, static_argnames=("out_dim", "tb"))
def fnn_forward(x, prepared_params, *, out_dim, tb=2048):
    """x: [B, F] float32.  prepared_params: output of prepare_fnn_params."""
    B, F = x.shape
    out_pad = prepared_params[-1][0].shape[1]

    # Batch tile: big (step-overhead/HBM-bound kernel), multiple of 16 (bf16 sublane packing),
    # capped so large batches get >=4 grid steps (lets v7x's 2 TensorCores both get work).
    B16 = _round_up(B, 16)
    TB = min(tb, B16)
    if B16 >= 4 * 256:
        TB = min(TB, _round_up(pl.cdiv(B16, 4), 256))
    TB = _round_up(TB, 16)
    B_pad = _round_up(B, TB)

    if B_pad != B:
        # Zero batch padding: padded rows are independent of real rows and sliced off below.
        x = jnp.pad(x, ((0, B_pad - B), (0, 0)))

    flat_args = [x]
    # x: batch-tiled, feature dim unpadded (block last dim == full array dim is legal).
    in_specs = [pl.BlockSpec((TB, F), lambda i: (i, 0))]
    w_bytes = 0
    for w_p, b_p in prepared_params:
        flat_args += [w_p, b_p]
        # Weights/biases: full-array blocks, constant index_map -> resident in VMEM across steps.
        in_specs += [pl.BlockSpec(w_p.shape, lambda i: (0, 0)),
                     pl.BlockSpec(b_p.shape, lambda i: (0, 0))]
        w_bytes += w_p.size * w_p.dtype.itemsize + b_p.size * b_p.dtype.itemsize

    grid = (B_pad // TB,)

    flops = 2 * B_pad * sum(w.shape[0] * w.shape[1] for w, _ in prepared_params)
    bytes_accessed = B_pad * F * 4 + B_pad * out_pad * 2 + w_bytes

    # VMEM budget: double-buffered x/out tiles + resident weights + live f32 activations,
    # with headroom; clamp to [16 MiB, 64 MiB] (v5e scoped default 16 MiB, v7x physical 64 MiB).
    vmem_need = 2 * (TB * F * 4 + TB * out_pad * 2) + w_bytes + 8 * TB * 128 * 4
    vmem_limit = int(min(64 << 20, max(16 << 20, int(vmem_need * 1.5) + (2 << 20))))

    out = pl.pallas_call(
        fnn_kernel,
        out_shape=jax.ShapeDtypeStruct((B_pad, out_pad), jnp.bfloat16),
        grid=grid,
        in_specs=in_specs,
        out_specs=pl.BlockSpec((TB, out_pad), lambda i: (i, 0)),
        compiler_params=pltpu.CompilerParams(
            dimension_semantics=("parallel",),
            vmem_limit_bytes=vmem_limit),
        cost_estimate=pl.CostEstimate(
            flops=flops, transcendentals=0, bytes_accessed=bytes_accessed),
    )(*flat_args)

    return out[:B, :out_dim].astype(jnp.float32)


def init_linear(key, fan_in, fan_out):
    """Deterministic init mimicking PyTorch nn.Linear default (uniform +/- 1/sqrt(fan_in))."""
    kw, kb = jax.random.split(key)
    bound = 1.0 / jnp.sqrt(float(fan_in))
    w = jax.random.uniform(kw, (fan_in, fan_out), jnp.float32, -bound, bound)
    b = jax.random.uniform(kb, (1, fan_out), jnp.float32, -bound, bound)
    return w, b


def fnn_reference(x, params):
    """Reference matching the kernel's bf16-matmul-input / f32-accumulate numerics."""
    h = x.astype(jnp.bfloat16)
    n = len(params)
    for i, (w, b) in enumerate(params):
        h = jnp.dot(h, w.astype(jnp.bfloat16),
                    preferred_element_type=jnp.float32) + b.astype(jnp.float32)
        if i < n - 1:
            h = jnp.maximum(h, 0.0).astype(jnp.bfloat16)
    return h


if __name__ == "__main__":
    # Small shapes consistent with the module: batch=8, numFeatures=32, output=8
    B, F, OUT = 8, 32, 8
    DENSE = 64

    key = jax.random.PRNGKey(0)
    kx, k1, k2, k3, k4, k5 = jax.random.split(key, 6)

    params = [
        init_linear(k1, F, DENSE),              # Linear(input, 64)
        init_linear(k2, DENSE, DENSE * 2),      # Linear(64, 128)
        init_linear(k3, DENSE * 2, DENSE * 2),  # Linear(128, 128)
        init_linear(k4, DENSE * 2, DENSE),      # Linear(128, 64)
        init_linear(k5, DENSE, OUT),            # Linear(64, output)
    ]
    prepared = prepare_fnn_params(params)       # hoisted: runs ONCE, not per forward call

    # Case 1: tiny batch (single grid step).
    x = jax.random.normal(kx, (B, F), jnp.float32)
    out = jax.block_until_ready(fnn_forward(x, prepared, out_dim=OUT))
    ref = fnn_reference(x, params)
    assert out.shape == (B, OUT), out.shape
    assert jnp.allclose(out, ref, atol=1.5e-2, rtol=2e-2), "mismatch vs reference (small batch)"

    # Case 2: batch not divisible by the tile, small tb -> exercises multi-step grid + batch pad.
    B2 = 300
    x2 = jax.random.normal(jax.random.PRNGKey(1), (B2, F), jnp.float32)
    out2 = jax.block_until_ready(fnn_forward(x2, prepared, out_dim=OUT, tb=128))
    ref2 = fnn_reference(x2, params)
    assert out2.shape == (B2, OUT), out2.shape
    assert jnp.allclose(out2, ref2, atol=1.5e-2, rtol=2e-2), "mismatch vs reference (tiled batch)"

    # Case 3: larger batch, default tb -> exercises the >=4-grid-step cap (v7x megacore path).
    B3 = 2048
    x3 = jax.random.normal(jax.random.PRNGKey(2), (B3, F), jnp.float32)
    out3 = jax.block_until_ready(fnn_forward(x3, prepared, out_dim=OUT))
    ref3 = fnn_reference(x3, params)
    assert out3.shape == (B3, OUT), out3.shape
    assert jnp.allclose(out3, ref3, atol=1.5e-2, rtol=2e-2), "mismatch vs reference (large batch)"

    print("KERNEL_OK")
</pallas_src>

<mosaic_0001>
module attributes {stable_mosaic.version = 11 : i64} {
  func.func @fnn_kernel(%arg0: i32, %arg1: memref<16x32xf32, #tpu.memory_space<vmem>>, %arg2: memref<32x128xbf16, #tpu.memory_space<vmem>>, %arg3: memref<1x128xf32, #tpu.memory_space<vmem>>, %arg4: memref<128x128xbf16, #tpu.memory_space<vmem>>, %arg5: memref<1x128xf32, #tpu.memory_space<vmem>>, %arg6: memref<128x128xbf16, #tpu.memory_space<vmem>>, %arg7: memref<1x128xf32, #tpu.memory_space<vmem>>, %arg8: memref<128x128xbf16, #tpu.memory_space<vmem>>, %arg9: memref<1x128xf32, #tpu.memory_space<vmem>>, %arg10: memref<128x128xbf16, #tpu.memory_space<vmem>>, %arg11: memref<1x128xf32, #tpu.memory_space<vmem>>, %arg12: memref<16x128xbf16, #tpu.memory_space<vmem>>) attributes {dimension_semantics = [#tpu.dimension_semantics<parallel>], iteration_bounds = array<i64: 1>, scalar_prefetch = 0 : i64, scratch_operands = 0 : i64, tpu.core_type = #tpu.core_type<tc>, window_params = [{transform_indices = @transform_0, window_bounds = array<i64: 16, 32>}, {pipeline_mode = #tpu.pipeline_mode<synchronous>, transform_indices = @transform_1, window_bounds = array<i64: 32, 128>}, {pipeline_mode = #tpu.pipeline_mode<synchronous>, transform_indices = @transform_2, window_bounds = array<i64: 1, 128>}, {pipeline_mode = #tpu.pipeline_mode<synchronous>, transform_indices = @transform_3, window_bounds = array<i64: 128, 128>}, {pipeline_mode = #tpu.pipeline_mode<synchronous>, transform_indices = @transform_4, window_bounds = array<i64: 1, 128>}, {pipeline_mode = #tpu.pipeline_mode<synchronous>, transform_indices = @transform_5, window_bounds = array<i64: 128, 128>}, {pipeline_mode = #tpu.pipeline_mode<synchronous>, transform_indices = @transform_6, window_bounds = array<i64: 1, 128>}, {pipeline_mode = #tpu.pipeline_mode<synchronous>, transform_indices = @transform_7, window_bounds = array<i64: 128, 128>}, {pipeline_mode = #tpu.pipeline_mode<synchronous>, transform_indices = @transform_8, window_bounds = array<i64: 1, 128>}, {pipeline_mode = #tpu.pipeline_mode<synchronous>, transform_indices = @transform_9, window_bounds = array<i64: 128, 128>}, {pipeline_mode = #tpu.pipeline_mode<synchronous>, transform_indices = @transform_10, window_bounds = array<i64: 1, 128>}, {transform_indices = @transform_11, window_bounds = array<i64: 16, 128>}]} {
    %c0 = arith.constant 0 : index
    %c0_0 = arith.constant 0 : index
    %0 = vector.load %arg1[%c0, %c0_0] : memref<16x32xf32, #tpu.memory_space<vmem>>, vector<16x32xf32>
    %1 = arith.truncf %0 : vector<16x32xf32> to vector<16x32xbf16>
    %c0_1 = arith.constant 0 : index
    %c0_2 = arith.constant 0 : index
    %2 = vector.load %arg2[%c0_1, %c0_2] : memref<32x128xbf16, #tpu.memory_space<vmem>>, vector<32x128xbf16>
    %cst = arith.constant dense<0.000000e+00> : vector<16x128xf32>
    %3 = tpu.matmul %1, %2, %cst {dimension_numbers = #tpu.dot_dimension_numbers<[1], [0], [0], [1], [0, 0, 1, 1], [], []>} : vector<16x32xbf16>, vector<32x128xbf16>, vector<16x128xf32> -> vector<16x128xf32>
    %c0_3 = arith.constant 0 : index
    %c0_4 = arith.constant 0 : index
    %4 = vector.load %arg3[%c0_3, %c0_4] : memref<1x128xf32, #tpu.memory_space<vmem>>, vector<1x128xf32>
    %5 = vector.broadcast %4 : vector<1x128xf32> to vector<16x128xf32>
    %6 = arith.addf %3, %5 : vector<16x128xf32>
    %cst_5 = arith.constant 0.000000e+00 : f32
    %7 = vector.broadcast %cst_5 : f32 to vector<16x128xf32>
    %8 = arith.maximumf %6, %7 : vector<16x128xf32>
    %9 = arith.truncf %8 : vector<16x128xf32> to vector<16x128xbf16>
    %c0_6 = arith.constant 0 : index
    %c0_7 = arith.constant 0 : index
    %10 = vector.load %arg4[%c0_6, %c0_7] : memref<128x128xbf16, #tpu.memory_space<vmem>>, vector<128x128xbf16>
    %cst_8 = arith.constant dense<0.000000e+00> : vector<16x128xf32>
    %11 = tpu.matmul %9, %10, %cst_8 {dimension_numbers = #tpu.dot_dimension_numbers<[1], [0], [0], [1], [0, 0, 1, 1], [], []>} : vector<16x128xbf16>, vector<128x128xbf16>, vector<16x128xf32> -> vector<16x128xf32>
    %c0_9 = arith.constant 0 : index
    %c0_10 = arith.constant 0 : index
    %12 = vector.load %arg5[%c0_9, %c0_10] : memref<1x128xf32, #tpu.memory_space<vmem>>, vector<1x128xf32>
    %13 = vector.broadcast %12 : vector<1x128xf32> to vector<16x128xf32>
    %14 = arith.addf %11, %13 : vector<16x128xf32>
    %cst_11 = arith.constant 0.000000e+00 : f32
    %15 = vector.broadcast %cst_11 : f32 to vector<16x128xf32>
    %16 = arith.maximumf %14, %15 : vector<16x128xf32>
    %17 = arith.truncf %16 : vector<16x128xf32> to vector<16x128xbf16>
    %c0_12 = arith.constant 0 : index
    %c0_13 = arith.constant 0 : index
    %18 = vector.load %arg6[%c0_12, %c0_13] : memref<128x128xbf16, #tpu.memory_space<vmem>>, vector<128x128xbf16>
    %cst_14 = arith.constant dense<0.000000e+00> : vector<16x128xf32>
    %19 = tpu.matmul %17, %18, %cst_14 {dimension_numbers = #tpu.dot_dimension_numbers<[1], [0], [0], [1], [0, 0, 1, 1], [], []>} : vector<16x128xbf16>, vector<128x128xbf16>, vector<16x128xf32> -> vector<16x128xf32>
    %c0_15 = arith.constant 0 : index
    %c0_16 = arith.constant 0 : index
    %20 = vector.load %arg7[%c0_15, %c0_16] : memref<1x128xf32, #tpu.memory_space<vmem>>, vector<1x128xf32>
    %21 = vector.broadcast %20 : vector<1x128xf32> to vector<16x128xf32>
    %22 = arith.addf %19, %21 : vector<16x128xf32>
    %cst_17 = arith.constant 0.000000e+00 : f32
    %23 = vector.broadcast %cst_17 : f32 to vector<16x128xf32>
    %24 = arith.maximumf %22, %23 : vector<16x128xf32>
    %25 = arith.truncf %24 : vector<16x128xf32> to vector<16x128xbf16>
    %c0_18 = arith.constant 0 : index
    %c0_19 = arith.constant 0 : index
    %26 = vector.load %arg8[%c0_18, %c0_19] : memref<128x128xbf16, #tpu.memory_space<vmem>>, vector<128x128xbf16>
    %cst_20 = arith.constant dense<0.000000e+00> : vector<16x128xf32>
    %27 = tpu.matmul %25, %26, %cst_20 {dimension_numbers = #tpu.dot_dimension_numbers<[1], [0], [0], [1], [0, 0, 1, 1], [], []>} : vector<16x128xbf16>, vector<128x128xbf16>, vector<16x128xf32> -> vector<16x128xf32>
    %c0_21 = arith.constant 0 : index
    %c0_22 = arith.constant 0 : index
    %28 = vector.load %arg9[%c0_21, %c0_22] : memref<1x128xf32, #tpu.memory_space<vmem>>, vector<1x128xf32>
    %29 = vector.broadcast %28 : vector<1x128xf32> to vector<16x128xf32>
    %30 = arith.addf %27, %29 : vector<16x128xf32>
    %cst_23 = arith.constant 0.000000e+00 : f32
    %31 = vector.broadcast %cst_23 : f32 to vector<16x128xf32>
    %32 = arith.maximumf %30, %31 : vector<16x128xf32>
    %33 = arith.truncf %32 : vector<16x128xf32> to vector<16x128xbf16>
    %c0_24 = arith.constant 0 : index
    %c0_25 = arith.constant 0 : index
    %34 = vector.load %arg10[%c0_24, %c0_25] : memref<128x128xbf16, #tpu.memory_space<vmem>>, vector<128x128xbf16>
    %cst_26 = arith.constant dense<0.000000e+00> : vector<16x128xf32>
    %35 = tpu.matmul %33, %34, %cst_26 {dimension_numbers = #tpu.dot_dimension_numbers<[1], [0], [0], [1], [0, 0, 1, 1], [], []>} : vector<16x128xbf16>, vector<128x128xbf16>, vector<16x128xf32> -> vector<16x128xf32>
    %c0_27 = arith.constant 0 : index
    %c0_28 = arith.constant 0 : index
    %36 = vector.load %arg11[%c0_27, %c0_28] : memref<1x128xf32, #tpu.memory_space<vmem>>, vector<1x128xf32>
    %37 = vector.broadcast %36 : vector<1x128xf32> to vector<16x128xf32>
    %38 = arith.addf %35, %37 : vector<16x128xf32>
    %39 = arith.truncf %38 : vector<16x128xf32> to vector<16x128xbf16>
    %c0_29 = arith.constant 0 : index
    %c0_30 = arith.constant 0 : index
    %40 = vector.load %arg12[%c0_29, %c0_30] : memref<16x128xbf16, #tpu.memory_space<vmem>>, vector<16x128xbf16>
    tpu.vector_store %arg12[%c0_29, %c0_30], %39 {strides = array<i32>} : memref<16x128xbf16, #tpu.memory_space<vmem>>, vector<16x128xbf16>,
    return
  }
  func.func @transform_0(%arg0: i32) -> (i32, i32) {
    %c0_i32 = arith.constant 0 : i32
    %c0_i32_0 = arith.constant 0 : i32
    return %arg0, %c0_i32 : i32, i32
  }
  func.func @transform_1(%arg0: i32) -> (i32, i32) {
    %c0_i32 = arith.constant 0 : i32
    %c0_i32_0 = arith.constant 0 : i32
    %c0_i32_1 = arith.constant 0 : i32
    return %c0_i32, %c0_i32_0 : i32, i32
  }
  func.func @transform_2(%arg0: i32) -> (i32, i32) {
    %c0_i32 = arith.constant 0 : i32
    %c0_i32_0 = arith.constant 0 : i32
    %c0_i32_1 = arith.constant 0 : i32
    return %c0_i32, %c0_i32_0 : i32, i32
  }
  func.func @transform_3(%arg0: i32) -> (i32, i32) {
    %c0_i32 = arith.constant 0 : i32
    %c0_i32_0 = arith.constant 0 : i32
    %c0_i32_1 = arith.constant 0 : i32
    return %c0_i32, %c0_i32_0 : i32, i32
  }
  func.func @transform_4(%arg0: i32) -> (i32, i32) {
    %c0_i32 = arith.constant 0 : i32
    %c0_i32_0 = arith.constant 0 : i32
    %c0_i32_1 = arith.constant 0 : i32
    return %c0_i32, %c0_i32_0 : i32, i32
  }
  func.func @transform_5(%arg0: i32) -> (i32, i32) {
    %c0_i32 = arith.constant 0 : i32
    %c0_i32_0 = arith.constant 0 : i32
    %c0_i32_1 = arith.constant 0 : i32
    return %c0_i32, %c0_i32_0 : i32, i32
  }
  func.func @transform_6(%arg0: i32) -> (i32, i32) {
    %c0_i32 = arith.constant 0 : i32
    %c0_i32_0 = arith.constant 0 : i32
    %c0_i32_1 = arith.constant 0 : i32
    return %c0_i32, %c0_i32_0 : i32, i32
  }
  func.func @transform_7(%arg0: i32) -> (i32, i32) {
    %c0_i32 = arith.constant 0 : i32
    %c0_i32_0 = arith.constant 0 : i32
    %c0_i32_1 = arith.constant 0 : i32
    return %c0_i32, %c0_i32_0 : i32, i32
  }
  func.func @transform_8(%arg0: i32) -> (i32, i32) {
    %c0_i32 = arith.constant 0 : i32
    %c0_i32_0 = arith.constant 0 : i32
    %c0_i32_1 = arith.constant 0 : i32
    return %c0_i32, %c0_i32_0 : i32, i32
  }
  func.func @transform_9(%arg0: i32) -> (i32, i32) {
    %c0_i32 = arith.constant 0 : i32
    %c0_i32_0 = arith.constant 0 : i32
    %c0_i32_1 = arith.constant 0 : i32
    return %c0_i32, %c0_i32_0 : i32, i32
  }
  func.func @transform_10(%arg0: i32) -> (i32, i32) {
    %c0_i32 = arith.constant 0 : i32
    %c0_i32_0 = arith.constant 0 : i32
    %c0_i32_1 = arith.constant 0 : i32
    return %c0_i32, %c0_i32_0 : i32, i32
  }
  func.func @transform_11(%arg0: i32) -> (i32, i32) {
    %c0_i32 = arith.constant 0 : i32
    %c0_i32_0 = arith.constant 0 : i32
    return %arg0, %c0_i32 : i32, i32
  }
}

</mosaic_0001>

<bundles_post_ra>
// kernel: fnn_forward.1
= control target key start
LH: loop header
LB: loop body
LE: loop exit
PB: predicated region body
PF: predicated region fallthrough
CT: control target
= control target key end

     0   :  { %16 = vsyncpa [#allocation3], 0  ;;  %s891_s0 = inlined_call_operand.vmem [shape: f32[16,32], index: 0, kind: input, shape index: {}]   ;;  %s892_s1 = inlined_call_operand.vmem [shape: bf16[32,128], index: 1, kind: input, shape index: {}]   ;;  %s893_s2 = inlined_call_operand.vmem [shape: f32[1,128], index: 2, kind: input, shape index: {}]   ;;  %s894_s3 = inlined_call_operand.hbm [shape: bf16[128,128], index: 3, kind: input, shape index: {}]   ;;  %s895_s4 = inlined_call_operand.vmem [shape: f32[1,128], index: 4, kind: input, shape index: {}]   ;;  %s896_s5 = inlined_call_operand.hbm [shape: bf16[128,128], index: 5, kind: input, shape index: {}]   ;;  %s897_s6 = inlined_call_operand.vmem [shape: f32[1,128], index: 6, kind: input, shape index: {}]   ;;  %s898_s7 = inlined_call_operand.hbm [shape: bf16[128,128], index: 7, kind: input, shape index: {}]   ;;  %s899_s8 = inlined_call_operand.vmem [shape: f32[1,128], index: 8, kind: input, shape index: {}]   ;;  %s900_s9 = inlined_call_operand.hbm [shape: bf16[128,128], index: 9, kind: input, shape index: {}]   ;;  %s901_s10 = inlined_call_operand.vmem [shape: f32[1,128], index: 10, kind: input, shape index: {}]   ;;  %s902_s11 = inlined_call_operand.vmem [shape: bf16[16,128], index: 11, kind: output, shape index: {}]  }
   0x1   :  { %17 = vsyncpa [#allocation5], 0 }
   0x2   :  { %18 = vsyncpa [#allocation8], 0  ;;  %s44_s19 = sshll.u32 %s896_s5, 4  ;;  %s783_s20 = smov [#allocation4]   ;;  %s45_s19 = int_to_ptr.hbm [resolvable:$true] %s44_s19 }
   0x3   :  { %s46_s21 = sshll.u32 %s783_s20, 4  ;;  %s29_s24 = sshll.u32 %s894_s3, 4  ;;  %s47_s21 = int_to_ptr.vmem [resolvable:$true] %s46_s21  ;;  %s30_s24 = int_to_ptr.hbm [resolvable:$true] %s29_s24 }
   0x4   :  { %s784_s25 = smov 64   ;;  %s785_s26 = smov 4  }
   0x5   :  { %52 = dma.hbm_to_vmem [thread:$0]  %s45_s19, 1024, %s47_s21, [#allocation5], %s784_s25, %s784_s25, %s785_s26  }
   0x6   :  { %s786_s27 = smov [#allocation2]   ;;  %s59_s12 = sshll.u32 %s898_s7, 4  ;;  %s60_s12 = int_to_ptr.hbm [resolvable:$true] %s59_s12 }
   0x7   :  { %s31_s28 = sshll.u32 %s786_s27, 4  ;;  %s74_s14 = sshll.u32 %s900_s9, 4  ;;  %s32_s28 = int_to_ptr.vmem [resolvable:$true] %s31_s28  ;;  %s75_s14 = int_to_ptr.hbm [resolvable:$true] %s74_s14 }
   0x8   :  { %37 = dma.hbm_to_vmem [thread:$0]  %s30_s24, 1024, %s32_s28, [#allocation3], %s784_s25, %s784_s25, %s785_s26  }
   0x9   :  { %s787_s15 = smov [#allocation6]   ;;  %s788_s3 = smov [#allocation7]  }
   0xa   :  { %s61_s16 = sshll.u32 %s787_s15, 4  ;;  %s76_s17 = sshll.u32 %s788_s3, 4  ;;  %s62_s16 = int_to_ptr.vmem [resolvable:$true] %s61_s16  ;;  %s77_s17 = int_to_ptr.vmem [resolvable:$true] %s76_s17 }
   0xb   :  { %67 = dma.hbm_to_vmem [thread:$0]  %s60_s12, 1024, %s62_s16, [#allocation5], %s784_s25, %s784_s25, %s785_s26  }
   0xc   :  { %82 = dma.hbm_to_vmem [thread:$0]  %s75_s14, 1024, %s77_s17, [#allocation8], %s784_s25, %s784_s25, %s785_s26  }
   0xd   :  { %777 = dma.done.wait [#allocation3], 1024  }
   0xe   :  { %778 = vsyncadd [#allocation3], 4294966272 }
   0xf   :  { %779 = dma.done.wait [#allocation5], 2048  }
  0x10   :  { %780 = vsyncadd [#allocation5], 4294965248 }
  0x11   :  { %781 = dma.done.wait [#allocation8], 1024  }
  0x12   :  { %782 = vsyncadd [#allocation8], 4294966272  ;;  %v632_v0 = vld [vmem:[%s892_s1 + $0x8] sm:$0xff]  ;;  %v631_v1 = vld [vmem:[%s892_s1] sm:$0xff]  ;;  %vm125_vm0 = vcmask 261120  }
  0x13   :  { %v640_v2 = vld [vmem:[#allocation2 + $0x38] sm:$0xff]  ;;  %135 = vmatpush.bf16.msra.mxu0 %v632_v0  ;;  %v102_v3 = vld [vmem:[%s891_s0] sm:$0xff]  ;;  %v103_v4 = vld [vmem:[%s891_s0 + $0x8] sm:$0xff] }
  0x14   :  { %214 = vmatpush.bf16.msra.mxu1 %v640_v2  ;;  %v639_v5 = vld [vmem:[#allocation2 + $0x30] sm:$0xff]  ;;  %v104_v6 = vpack.c.bf16 %v103_v4, %v102_v3  ;;  %v638_v7 = vld [vmem:[#allocation2 + $0x28] sm:$0xff]  ;;  %v637_v8 = vld [vmem:[#allocation2 + $0x20] sm:$0xff] }
  0x15   :  { %v636_v9 = vld [vmem:[#allocation2 + $0x18] sm:$0xff]  ;;  %v635_v10 = vld [vmem:[#allocation2 + $0x10] sm:$0xff]  ;;  %v634_v11 = vld [vmem:[#allocation2 + $0x8] sm:$0xff] }
  0x16   :  { %v633_v12 = vld [vmem:[#allocation2] sm:$0xff]  ;;  %v648_v13 = vld [vmem:[#allocation4 + $0x38] sm:$0xff]  ;;  %v647_v14 = vld [vmem:[#allocation4 + $0x30] sm:$0xff] }
  0x17   :  { %136 = vmatpush.bf16.msra.mxu0 %v631_v1  ;;  %299 = vmatpush.bf16.msra.mxu2 %v648_v13  ;;  %v646_v15 = vld [vmem:[#allocation4 + $0x28] sm:$0xff]  ;;  %v645_v16 = vld [vmem:[#allocation4 + $0x20] sm:$0xff]  ;;  %v644_v25 = vld [vmem:[#allocation4 + $0x18] sm:$0xff] }
  0x18   :  { %215 = vmatpush.bf16.msra.mxu1 %v639_v5  ;;  %v676_v18 = vld [vmem:[%s893_s2] ss:$0 sm:$0xff]  ;;  %v643_v26 = vld [vmem:[#allocation4 + $0x10] sm:$0xff]  ;;  %v642_v27 = vld [vmem:[#allocation4 + $0x8] sm:$0xff] }
  0x19   :  { %v641_v28 = vld [vmem:[#allocation4] sm:$0xff]  ;;  %v656_v29 = vld [vmem:[#allocation6 + $0x38] sm:$0xff]  ;;  %v655_v30 = vld [vmem:[#allocation6 + $0x30] sm:$0xff] }
  0x1a   :  { %502 = vmatmul.msk.bf16.vlgmr.msra.gmra.mxu0 %vm125_vm0, %v104_v6  ;;  %384 = vmatpush.bf16.msra.mxu3 %v656_v29  ;;  %v654_v31 = vld [vmem:[#allocation6 + $0x28] sm:$0xff]  ;;  %v653_v32 = vld [vmem:[#allocation6 + $0x20] sm:$0xff]  ;;  %v652_v41 = vld [vmem:[#allocation6 + $0x18] sm:$0xff] }
  0x1b   :  { %300 = vmatpush.bf16.msra.mxu2 %v647_v14  ;;  %v677_v34 = vld [vmem:[%s895_s4] ss:$0 sm:$0xff]  ;;  %v651_v42 = vld [vmem:[#allocation6 + $0x10] sm:$0xff]  ;;  %v650_v43 = vld [vmem:[#allocation6 + $0x8] sm:$0xff] }
  0x1c   :  { %216 = vmatpush.bf16.msra.mxu1 %v638_v7  ;;  %v649_v44 = vld [vmem:[#allocation6] sm:$0xff]  ;;  %v664_v45 = vld [vmem:[#allocation7 + $0x38] sm:$0xff]  ;;  %v663_v46 = vld [vmem:[#allocation7 + $0x30] sm:$0xff] }
  0x1d   :  { %469 = vmatpush.bf16.msrb.mxu0 %v664_v45  ;;  %v662_v47 = vld [vmem:[#allocation7 + $0x28] sm:$0xff]  ;;  %v661_v48 = vld [vmem:[#allocation7 + $0x20] sm:$0xff]  ;;  %v660_v57 = vld [vmem:[#allocation7 + $0x18] sm:$0xff] }
  0x1e   :  { %385 = vmatpush.bf16.msra.mxu3 %v655_v30  ;;  %v678_v50 = vld [vmem:[%s897_s6] ss:$0 sm:$0xff]  ;;  %v659_v58 = vld [vmem:[#allocation7 + $0x10] sm:$0xff]  ;;  %v658_v59 = vld [vmem:[#allocation7 + $0x8] sm:$0xff] }
  0x1f   :  { %301 = vmatpush.bf16.msra.mxu2 %v646_v15  ;;  %v657_v60 = vld [vmem:[#allocation7] sm:$0xff] }
  0x20   :  { %217 = vmatpush.bf16.msra.mxu1 %v637_v8  ;;  %v679_v62 = vld [vmem:[%s899_s8] ss:$0 sm:$0xff] }
  0x21   :  { %470 = vmatpush.bf16.msrb.mxu0 %v663_v46  ;;  %v680_v6 = vld [vmem:[%s901_s10] ss:$0 sm:$0xff] }
  0x22   :  { %386 = vmatpush.bf16.msra.mxu3 %v654_v31 }
  0x23   :  { %302 = vmatpush.bf16.msra.mxu2 %v645_v16 }
  0x24   :  { %218 = vmatpush.bf16.msra.mxu1 %v636_v9 }
  0x25   :  { %471 = vmatpush.bf16.msrb.mxu0 %v662_v47 }
  0x26   :  { %387 = vmatpush.bf16.msra.mxu3 %v653_v32 }
  0x27   :  { %303 = vmatpush.bf16.msra.mxu2 %v644_v25 }
  0x28   :  { %219 = vmatpush.bf16.msra.mxu1 %v635_v10 }
  0x29   :  { %472 = vmatpush.bf16.msrb.mxu0 %v661_v48 }
  0x2a   :  { %388 = vmatpush.bf16.msra.mxu3 %v652_v41 }
  0x2b   :  { %304 = vmatpush.bf16.msra.mxu2 %v643_v26 }
  0x2c   :  { %220 = vmatpush.bf16.msra.mxu1 %v634_v11 }
  0x2d   :  { %473 = vmatpush.bf16.msrb.mxu0 %v660_v57 }
  0x2e   :  { %389 = vmatpush.bf16.msra.mxu3 %v651_v42 }
  0x2f   :  { %305 = vmatpush.bf16.msra.mxu2 %v642_v27 }
  0x30   :  { %221 = vmatpush.bf16.msra.mxu1 %v633_v12 }
  0x31   :  { %474 = vmatpush.bf16.msrb.mxu0 %v659_v58 }
  0x32   :  { %390 = vmatpush.bf16.msra.mxu3 %v650_v43 }
  0x33   :  { %306 = vmatpush.bf16.msra.mxu2 %v641_v28 }
  0x35   :  { %475 = vmatpush.bf16.msrb.mxu0 %v658_v59 }
  0x36   :  { %391 = vmatpush.bf16.msra.mxu3 %v649_v44 }
  0x39   :  { %476 = vmatpush.bf16.msrb.mxu0 %v657_v60 }
  0x97   :  { %v138_v17 = vpop.f32.mrf.mxu0 }
  0x98   :  { %v139_v19 = vadd.f32 %v676_v18, %v138_v17 }
  0x9a   :  { %v143_v22 = vmax.f32 %v139_v19, 0.0 }
  0x9f   :  { %v140_v20 = vpop.f32.mrf.mxu0 }
  0xa0   :  { %v141_v21 = vadd.f32 %v676_v18, %v140_v20 }
  0xa2   :  { %v144_v23 = vmax.f32 %v141_v21, 0.0 }
  0xa4   :  { %v145_v24 = vpack.c.bf16 %v144_v23, %v143_v22 }
  0xa6   :  { %222 = vmatmul.bf16.vlgmr.msra.gmra.mxu1 %v145_v24 }
 0x123   :  { %v223_v33 = vpop.f32.mrf.mxu1 }
 0x124   :  { %v224_v35 = vadd.f32 %v677_v34, %v223_v33 }
 0x126   :  { %v228_v38 = vmax.f32 %v224_v35, 0.0 }
 0x12b   :  { %v225_v36 = vpop.f32.mrf.mxu1 }
 0x12c   :  { %v226_v37 = vadd.f32 %v677_v34, %v225_v36 }
 0x12e   :  { %v229_v39 = vmax.f32 %v226_v37, 0.0 }
 0x130   :  { %v230_v40 = vpack.c.bf16 %v229_v39, %v228_v38 }
 0x132   :  { %307 = vmatmul.bf16.vlgmr.msra.gmra.mxu2 %v230_v40 }
 0x1b5   :  { %v308_v49 = vpop.f32.mrf.mxu2 }
 0x1b6   :  { %v309_v51 = vadd.f32 %v678_v50, %v308_v49 }
 0x1b8   :  { %v313_v54 = vmax.f32 %v309_v51, 0.0 }
 0x1bd   :  { %v310_v52 = vpop.f32.mrf.mxu2 }
 0x1be   :  { %v311_v53 = vadd.f32 %v678_v50, %v310_v52 }
 0x1c0   :  { %v314_v55 = vmax.f32 %v311_v53, 0.0 }
 0x1c2   :  { %v315_v56 = vpack.c.bf16 %v314_v55, %v313_v54 }
 0x1c4   :  { %392 = vmatmul.bf16.vlgmr.msra.gmra.mxu3 %v315_v56 }
 0x247   :  { %v393_v61 = vpop.f32.mrf.mxu3 }
 0x248   :  { %v394_v63 = vadd.f32 %v679_v62, %v393_v61 }
 0x24a   :  { %v398_v2 = vmax.f32 %v394_v63, 0.0 }
 0x24f   :  { %v395_v0 = vpop.f32.mrf.mxu3 }
 0x250   :  { %v396_v1 = vadd.f32 %v679_v62, %v395_v0 }
 0x252   :  { %v399_v3 = vmax.f32 %v396_v1, 0.0 }
 0x254   :  { %v400_v4 = vpack.c.bf16 %v399_v3, %v398_v2 }
 0x256   :  { %477 = vmatmul.bf16.vlgmr.msrb.gmra.mxu0 %v400_v4 }
 0x2d3   :  { %v478_v5 = vpop.f32.mrf.mxu0 }
 0x2d4   :  { %v479_v8 = vadd.f32 %v680_v6, %v478_v5 }
 0x2db   :  { %v480_v7 = vpop.f32.mrf.mxu0 }
 0x2dc   :  { %v481_v9 = vadd.f32 %v680_v6, %v480_v7 }
 0x2de   :  { %v668_v10 = vpack.c.bf16 %v481_v9, %v479_v8 }
 0x2e0   :  { %669 = vst [vmem:[%s902_s11] sm:$0xff] %v668_v10  }
 0x2e1   :  { %491 = vsyncpa [#allocation3], 1 }
 0x2e2   :  { %492 = vsyncpa [#allocation5], 1 }
 0x2e3   :  { %493 = vsyncpa [#allocation8], 1 }

</bundles_post_ra>
